<compile_context>
chip_gen: v7x
topology: tpu7x:2x2x1
jax: 0.10.0
libtpu: 0.0.40
codegen_flags: <defaults>
</compile_context>

<pallas_src>
import jax
import jax.numpy as jnp
import numpy as np
from jax import lax
from jax.experimental import pallas as pl
from jax.experimental.pallas import tpu as pltpu


def _round_up(x: int, m: int) -> int:
    return (x + m - 1) // m * m


# --------------------------- kernel 1: hidden vector ---------------------------

def _make_hidden_kernel(true_h: int, hp: int, channels_per_slab: int,
                        kernel_size: int, pad: int):
    """Per channel-slab: BN0 -> Conv1d taps -> BN1 -> relu -> partial fc matmul.
    The fc result is accumulated in f32 across slabs; the last slab applies
    fc bias + BN2 + relu and emits the bf16 hidden vector (eval mode)."""
    K = kernel_size
    CS = channels_per_slab

    def kernel(heads_ref, rels_ref, fcw_ref, fcb_ref, bn2s_ref, bn2b_ref,
               convw_ref, convb_ref, bn0s_ref, bn0b_ref, bn1s_ref, bn1b_ref,
               hid_ref, feat_ref, acc_ref):
        s = pl.program_id(0)
        B = heads_ref.shape[0]

        @pl.when(s == 0)
        def _():
            acc_ref[...] = jnp.zeros_like(acc_ref)

        # bn0 (eval-mode affine, per input channel); input dropout = identity.
        h0 = heads_ref[...] * bn0s_ref[0] + bn0b_ref[0]
        r0 = rels_ref[...] * bn0s_ref[1] + bn0b_ref[1]

        idx = lax.broadcasted_iota(jnp.int32, (B, hp), 1)
        if hp != true_h:
            # lane-padded columns hold bn0 bias (0*scale+bias) -> zero them so the
            # conv taps only ever see real data or zeros.
            valid = idx < true_h
            h0 = jnp.where(valid, h0, 0.0)
            r0 = jnp.where(valid, r0, 0.0)

        # Conv1d(in=2, out=C, K, padding=K//2) realized as K shifted taps:
        #   out[b,c,h] = bias[c] + sum_{ic,i} w[c,ic,i] * x[b,ic,h+i-pad]
        # Boundary mask uses the TRUE hidden width, not the lane-padded one.
        h_taps, r_taps = [], []
        for i in range(K):
            d = i - pad
            if d == 0:
                h_taps.append(h0)
                r_taps.append(r0)
            else:
                m = (idx + d >= 0) & (idx + d < true_h)
                sh = (-d) % hp  # jnp.roll-style rotation (XLU), mask the wrap-around
                h_taps.append(jnp.where(m, pltpu.roll(h0, sh, axis=1), 0.0))
                r_taps.append(jnp.where(m, pltpu.roll(r0, sh, axis=1), 0.0))

        # conv taps + bias -> bn1 -> relu for the CS channels of this slab, written
        # into the flat (B, CS*Hp) bf16 feature slab in torch .view(B,-1) order.
        # TODO(synk): for very large channel counts, contract the 2K tap axis on the
        # MXU (dot against the (CS, 2K) weight block) instead of CS*2K VALU FMAs.
        for cc in range(CS):               # CS is small (<=16): bounded unroll
            c = s * CS + cc                 # global (padded) channel index
            wbase = c * (2 * K)             # 1-D SMEM conv-weight layout: c*2K+ic*K+i
            feat = jnp.zeros((B, hp), jnp.float32)
            for i in range(K):
                feat = feat + convw_ref[wbase + i] * h_taps[i]        # ic = 0 (heads)
                feat = feat + convw_ref[wbase + K + i] * r_taps[i]    # ic = 1 (rels)
            feat = feat + convb_ref[c]
            feat = feat * bn1s_ref[c] + bn1b_ref[c]   # bn1 (eval); feature dropout = id
            feat = jnp.maximum(feat, 0.0)
            feat_ref[:, cc * hp:(cc + 1) * hp] = feat.astype(feat_ref.dtype)

        # Partial fc matmul for this channel slab: bf16 x bf16 -> f32 accumulate.
        # fcw_ref is the HBM-streamed (CS*Hp, Hp) slab of the fc weight (bf16).
        acc_ref[...] += jnp.dot(feat_ref[...], fcw_ref[...],
                                preferred_element_type=jnp.float32)

        @pl.when(s == pl.num_programs(0) - 1)
        def _():
            hid = acc_ref[...] + fcb_ref[...]
            hid = hid * bn2s_ref[...] + bn2b_ref[...]   # bn2 (eval); hidden dropout = id
            hid = jnp.maximum(hid, 0.0)
            hid_ref[...] = hid.astype(hid_ref.dtype)    # bf16 for the scores GEMM

    return kernel


# --------------------------- kernel 2: scores GEMM ---------------------------

def _scores_kernel(hid_ref, obj_ref, out_ref):
    # (B, Hp) x (TN, Hp) contracting the shared Hp axis (NT form: no per-step
    # transpose of the obj tile on the XLU; feeds the MXU directly).
    out_ref[...] = lax.dot_general(
        hid_ref[...], obj_ref[...],
        dimension_numbers=(((1,), (1,)), ((), ())),
        preferred_element_type=jnp.float32).astype(out_ref.dtype)


# --------------------------- static prep (hoist out of forward) ---------------------------

def prepare_convtrans(obj_emb, params, *, tile_n=8192, channel_slab=16):
    """One-time prep per (params, obj_emb) update: fold eval-mode BN, pad layouts,
    cast the two dominant HBM streams (fc weight, obj table) to bf16.  Cache the
    returned dict across forward calls -- this avoids re-padding / re-casting the
    big static tensors on every forward."""
    N, H = obj_emb.shape
    conv_w = params["conv_w"]                    # (C, 2, K)
    C, two, K = conv_w.shape
    assert two == 2
    assert K % 2 == 1, "ConvTransE assumes odd kernel_size (same-length conv)"
    eps = 1e-5

    def fold_bn(gamma, beta, mean, var):
        scale = gamma / jnp.sqrt(var + eps)
        return scale.astype(jnp.float32), (beta - mean * scale).astype(jnp.float32)

    bn0_s, bn0_b = fold_bn(*params["bn0"])
    bn1_s, bn1_b = fold_bn(*params["bn1"])
    bn2_s, bn2_b = fold_bn(*params["bn2"])

    # lane-align the hidden dim; pad the channel dim to a slab multiple (padded
    # channels: zero conv weights/bias + zero folded bn1 -> relu(0) = 0 features,
    # zero fc rows -> contribute nothing).
    Hp = _round_up(H, 128)
    dH = Hp - H
    CS = max(1, min(channel_slab, C))
    C_pad = _round_up(C, CS)

    # entity tiling: multi-MiB lane-dense obj tiles so the ~0.35us per-grid-step
    # overhead is amortized (mem-bound GEMM near HBM roofline).  bf16 BEFORE pad
    # so the one-off copy is half the traffic; padded rows are zero.
    tile_n = max(128, _round_up(tile_n, 128))
    if N <= tile_n:
        tile_n = _round_up(N, 128)
    max_tile = max(128, ((16 << 20) // (2 * Hp * 2)) // 128 * 128)  # obj dbl-buf <=16MiB
    tile_n = min(tile_n, max_tile)
    Np = _round_up(N, tile_n)
    obj_bf16 = jnp.pad(obj_emb.astype(jnp.bfloat16), ((0, Np - N), (0, dH)))

    # conv params: 1-D SMEM layout (a 2-D (C,2K) SMEM operand would pad to
    # [ceil(C/8)*8, 128] words); flat index = c*2K + ic*K + i.
    conv_w_p = jnp.pad(conv_w.astype(jnp.float32), ((0, C_pad - C), (0, 0), (0, 0)))
    conv_w_flat = conv_w_p.reshape(C_pad * 2 * K)
    conv_b = jnp.pad(params["conv_b"].astype(jnp.float32), (0, C_pad - C))
    bn1_s = jnp.pad(bn1_s, (0, C_pad - C))
    bn1_b = jnp.pad(bn1_b, (0, C_pad - C))

    # fc weight (H, C*H), flat input index c*H + h: pad both hidden axes and the
    # channel axis, transpose to (C_pad*Hp, Hp) and cast bf16 -- it is the largest
    # single HBM stream of the forward and is streamed slab-by-slab in kernel 1.
    fc_w = params["fc_w"].astype(jnp.float32).reshape(H, C, H)
    fc_w = jnp.pad(fc_w, ((0, dH), (0, C_pad - C), (0, dH)))
    fc_wT = fc_w.reshape(Hp, C_pad * Hp).T.astype(jnp.bfloat16)     # (C_pad*Hp, Hp)
    fc_b = jnp.pad(params["fc_b"].astype(jnp.float32), (0, dH)).reshape(1, Hp)
    bn2_s = jnp.pad(bn2_s, (0, dH)).reshape(1, Hp)
    bn2_b = jnp.pad(bn2_b, (0, dH)).reshape(1, Hp)

    return dict(H=H, Hp=Hp, N=N, Np=Np, C=C, C_pad=C_pad, CS=CS, K=K,
                tile_n=tile_n, obj_bf16=obj_bf16, fc_wT=fc_wT, fc_b=fc_b,
                bn2_s=bn2_s, bn2_b=bn2_b, conv_w_flat=conv_w_flat, conv_b=conv_b,
                bn0_s=bn0_s, bn0_b=bn0_b, bn1_s=bn1_s, bn1_b=bn1_b)


# --------------------------- forward ---------------------------

def convtrans_ens_forward(heads, rels, prep):
    B, H = heads.shape
    assert H == prep["H"]
    Hp, Np, tile_n = prep["Hp"], prep["Np"], prep["tile_n"]
    C_pad, CS, K = prep["C_pad"], prep["CS"], prep["K"]
    dH = Hp - H
    num_slabs = C_pad // CS

    heads_p = jnp.pad(heads.astype(jnp.float32), ((0, 0), (0, dH)))
    rels_p = jnp.pad(rels.astype(jnp.float32), ((0, 0), (0, dH)))

    smem = pl.BlockSpec(memory_space=pltpu.MemorySpace.SMEM)

    # ---- call 1: hidden vector; fc weight streamed in bf16 channel slabs ----
    ws1 = (2 * 2 * B * Hp * 4            # heads/rels (double-buffered)
           + 2 * CS * Hp * Hp * 2        # fc weight slab bf16 (double-buffered)
           + B * CS * Hp * 2             # feature slab scratch (bf16)
           + B * Hp * 4                  # f32 hid accumulator
           + 2 * B * Hp * 2              # bf16 hid output
           + 6 * Hp * 4 + (2 << 20))     # small params + margin
    hid = pl.pallas_call(
        _make_hidden_kernel(H, Hp, CS, K, K // 2),
        out_shape=jax.ShapeDtypeStruct((B, Hp), jnp.bfloat16),
        grid=(num_slabs,),
        in_specs=[
            pl.BlockSpec((B, Hp), lambda s: (0, 0)),             # heads (resident)
            pl.BlockSpec((B, Hp), lambda s: (0, 0)),             # rels  (resident)
            pl.BlockSpec((CS * Hp, Hp), lambda s: (s, 0)),       # fc_wT slab (streamed)
            pl.BlockSpec((1, Hp), lambda s: (0, 0)),             # fc_b
            pl.BlockSpec((1, Hp), lambda s: (0, 0)),             # bn2 scale
            pl.BlockSpec((1, Hp), lambda s: (0, 0)),             # bn2 bias
            smem, smem,                                          # conv_w_flat, conv_b
            smem, smem,                                          # bn0 scale/bias
            smem, smem,                                          # bn1 scale/bias
        ],
        out_specs=pl.BlockSpec((B, Hp), lambda s: (0, 0)),
        scratch_shapes=[pltpu.VMEM((B, CS * Hp), jnp.bfloat16),  # per-slab features
                        pltpu.VMEM((B, Hp), jnp.float32)],       # fc accumulator
        compiler_params=pltpu.CompilerParams(
            dimension_semantics=("arbitrary",),                  # slab axis = reduction
            vmem_limit_bytes=int(min(max(ws1, 32 << 20), 48 << 20))),
    )(heads_p, rels_p, prep["fc_wT"], prep["fc_b"], prep["bn2_s"], prep["bn2_b"],
      prep["conv_w_flat"], prep["conv_b"], prep["bn0_s"], prep["bn0_b"],
      prep["bn1_s"], prep["bn1_b"])

    # ---- call 2: HBM-bound scores GEMM, parallel over big entity tiles ----
    ws2 = (2 * tile_n * Hp * 2           # obj tile bf16 (double-buffered)
           + 2 * B * tile_n * 4          # out tile f32 (double-buffered)
           + 4 * B * Hp * 2 + (2 << 20))
    scores = pl.pallas_call(
        _scores_kernel,
        out_shape=jax.ShapeDtypeStruct((B, Np), jnp.float32),
        grid=(Np // tile_n,),
        in_specs=[pl.BlockSpec((B, Hp), lambda j: (0, 0)),       # hid (grid-invariant)
                  pl.BlockSpec((tile_n, Hp), lambda j: (j, 0))], # obj_emb tile
        out_specs=pl.BlockSpec((B, tile_n), lambda j: (0, j)),
        compiler_params=pltpu.CompilerParams(
            dimension_semantics=("parallel",),                   # megacore on v7x
            vmem_limit_bytes=int(min(max(ws2, 32 << 20), 48 << 20))),
    )(hid, prep["obj_bf16"])

    return scores[:, :prep["N"]]


# ---------------- deterministic parameter init + pure-JAX reference ----------------

def init_params(key, hidden, channels, ksize):
    ks = jax.random.split(key, 8)
    p = {}
    p["conv_w"] = 0.1 * jax.random.normal(ks[0], (channels, 2, ksize), jnp.float32)
    p["conv_b"] = 0.1 * jax.random.normal(ks[1], (channels,), jnp.float32)
    p["fc_w"] = (jax.random.normal(ks[2], (hidden, channels * hidden), jnp.float32)
                 / jnp.sqrt(channels * hidden))
    p["fc_b"] = 0.1 * jax.random.normal(ks[3], (hidden,), jnp.float32)

    def bn(k, n):
        k1, k2, k3, k4 = jax.random.split(k, 4)
        gamma = 1.0 + 0.1 * jax.random.normal(k1, (n,), jnp.float32)
        beta = 0.1 * jax.random.normal(k2, (n,), jnp.float32)
        mean = 0.1 * jax.random.normal(k3, (n,), jnp.float32)
        var = jax.random.uniform(k4, (n,), jnp.float32, minval=0.5, maxval=1.5)
        return gamma, beta, mean, var

    p["bn0"] = bn(ks[4], 2)
    p["bn1"] = bn(ks[5], channels)
    p["bn2"] = bn(ks[6], hidden)
    return p


def ref_forward(heads, rels, obj_emb, params):
    # TODO(synk): training-mode BatchNorm (batch statistics) and Dropout are not
    # modeled; both kernel and reference use eval-mode semantics.
    eps = 1e-5

    def bn_apply(x, stats, axis):
        gamma, beta, mean, var = stats
        shape = [1] * x.ndim
        shape[axis] = -1
        scale = (gamma / jnp.sqrt(var + eps)).reshape(shape)
        bias = (beta - mean * gamma / jnp.sqrt(var + eps)).reshape(shape)
        return x * scale + bias

    B, H = heads.shape
    conv_w = params["conv_w"]
    C, _, K = conv_w.shape
    P = K // 2
    x = jnp.stack([heads, rels], axis=1)                  # (B, 2, H) == torch.stack dim=1
    x = bn_apply(x, params["bn0"], axis=1)
    xp = jnp.pad(x, ((0, 0), (0, 0), (P, P)))
    out = jnp.zeros((B, C, H), jnp.float32)
    for i in range(K):
        out = out + jnp.einsum("bch,oc->boh", xp[:, :, i:i + H], conv_w[:, :, i])
    out = out + params["conv_b"][None, :, None]
    out = bn_apply(out, params["bn1"], axis=1)
    out = jnp.maximum(out, 0.0)
    flat = out.reshape(B, C * H)                          # torch .view(B, -1) ordering
    hid = flat @ params["fc_w"].T + params["fc_b"]
    hid = bn_apply(hid, params["bn2"], axis=1)
    hid = jnp.maximum(hid, 0.0)
    return hid @ obj_emb.T


if __name__ == "__main__":
    def run_case(B, H, C, K, N, tile_n):
        key = jax.random.PRNGKey(0)
        k1, k2, k3, k4 = jax.random.split(key, 4)
        heads = jax.random.normal(k1, (B, H), jnp.float32)
        rels = jax.random.normal(k2, (B, H), jnp.float32)
        obj_emb = jax.random.normal(k3, (N, H), jnp.float32)
        params = init_params(k4, H, C, K)

        prep = prepare_convtrans(obj_emb, params, tile_n=tile_n)   # hoisted static prep
        scores = convtrans_ens_forward(heads, rels, prep)
        scores = jax.block_until_ready(scores)

        ref = ref_forward(heads, rels, obj_emb, params)
        # bf16 is used for the fc weight / features / obj_emb GEMMs (intentional
        # precision tradeoff) -> widened tolerance.
        np.testing.assert_allclose(np.asarray(scores), np.asarray(ref),
                                   rtol=2e-2, atol=1e-1)

    # lane-aligned config (B, hidden, channels, ksize, num_entities)
    run_case(B=8, H=128, C=4, K=3, N=256, tile_n=8192)
    # non-aligned hidden/entity counts -> exercises the H/N padding + mask-fix path
    run_case(B=8, H=96, C=3, K=5, N=200, tile_n=8192)

    print("KERNEL_OK")
</pallas_src>

<mosaic_0001>
module attributes {stable_mosaic.version = 11 : i64} {
  func.func @kernel(%arg0: i32, %arg1: memref<8x128xf32, #tpu.memory_space<vmem>>, %arg2: memref<8x128xf32, #tpu.memory_space<vmem>>, %arg3: memref<512x128xbf16, #tpu.memory_space<vmem>>, %arg4: memref<1x128xf32, #tpu.memory_space<vmem>>, %arg5: memref<1x128xf32, #tpu.memory_space<vmem>>, %arg6: memref<1x128xf32, #tpu.memory_space<vmem>>, %arg7: memref<24xf32, #tpu.memory_space<smem>>, %arg8: memref<4xf32, #tpu.memory_space<smem>>, %arg9: memref<2xf32, #tpu.memory_space<smem>>, %arg10: memref<2xf32, #tpu.memory_space<smem>>, %arg11: memref<4xf32, #tpu.memory_space<smem>>, %arg12: memref<4xf32, #tpu.memory_space<smem>>, %arg13: memref<8x128xbf16, #tpu.memory_space<vmem>>, %arg14: memref<8x512xbf16, #tpu.memory_space<vmem>>, %arg15: memref<8x128xf32, #tpu.memory_space<vmem>>) attributes {dimension_semantics = [#tpu.dimension_semantics<arbitrary>], iteration_bounds = array<i64: 1>, scalar_prefetch = 0 : i64, scratch_operands = 2 : i64, tpu.core_type = #tpu.core_type<tc>, window_params = [{pipeline_mode = #tpu.pipeline_mode<synchronous>, transform_indices = @transform_0, window_bounds = array<i64: 8, 128>}, {pipeline_mode = #tpu.pipeline_mode<synchronous>, transform_indices = @transform_1, window_bounds = array<i64: 8, 128>}, {transform_indices = @transform_2, window_bounds = array<i64: 512, 128>}, {pipeline_mode = #tpu.pipeline_mode<synchronous>, transform_indices = @transform_3, window_bounds = array<i64: 1, 128>}, {pipeline_mode = #tpu.pipeline_mode<synchronous>, transform_indices = @transform_4, window_bounds = array<i64: 1, 128>}, {pipeline_mode = #tpu.pipeline_mode<synchronous>, transform_indices = @transform_5, window_bounds = array<i64: 1, 128>}, {transform_indices = @transform_6, window_bounds = array<i64: 24>}, {transform_indices = @transform_7, window_bounds = array<i64: 4>}, {transform_indices = @transform_8, window_bounds = array<i64: 2>}, {transform_indices = @transform_9, window_bounds = array<i64: 2>}, {transform_indices = @transform_10, window_bounds = array<i64: 4>}, {transform_indices = @transform_11, window_bounds = array<i64: 4>}, {pipeline_mode = #tpu.pipeline_mode<synchronous>, transform_indices = @transform_12, window_bounds = array<i64: 8, 128>}]} {
    %c0_i32 = arith.constant 0 : i32
    %0 = arith.cmpi eq, %arg0, %c0_i32 : i32
    %1 = arith.extui %0 : i1 to i32
    %c0_i32_0 = arith.constant 0 : i32
    %2 = arith.cmpi ne, %1, %c0_i32_0 : i32
    scf.if %2 {
      %cst_86 = arith.constant 0.000000e+00 : f32
      %293 = vector.broadcast %cst_86 : f32 to vector<8x128xf32>
      %c0_87 = arith.constant 0 : index
      %c0_88 = arith.constant 0 : index
      %294 = vector.load %arg15[%c0_87, %c0_88] : memref<8x128xf32, #tpu.memory_space<vmem>>, vector<8x128xf32>
      tpu.vector_store %arg15[%c0_87, %c0_88], %293 {strides = array<i32>} : memref<8x128xf32, #tpu.memory_space<vmem>>, vector<8x128xf32>,
    } else {
    }
    %c0 = arith.constant 0 : index
    %c0_1 = arith.constant 0 : index
    %3 = vector.load %arg1[%c0, %c0_1] : memref<8x128xf32, #tpu.memory_space<vmem>>, vector<8x128xf32>
    %c0_2 = arith.constant 0 : index
    %4 = memref.load %arg9[%c0_2] : memref<2xf32, #tpu.memory_space<smem>>
    %5 = vector.broadcast %4 : f32 to vector<8x128xf32>
    %6 = arith.mulf %3, %5 : vector<8x128xf32>
    %c0_3 = arith.constant 0 : index
    %7 = memref.load %arg10[%c0_3] : memref<2xf32, #tpu.memory_space<smem>>
    %8 = vector.broadcast %7 : f32 to vector<8x128xf32>
    %9 = arith.addf %6, %8 : vector<8x128xf32>
    %c0_4 = arith.constant 0 : index
    %c0_5 = arith.constant 0 : index
    %10 = vector.load %arg2[%c0_4, %c0_5] : memref<8x128xf32, #tpu.memory_space<vmem>>, vector<8x128xf32>
    %c1 = arith.constant 1 : index
    %11 = memref.load %arg9[%c1] : memref<2xf32, #tpu.memory_space<smem>>
    %12 = vector.broadcast %11 : f32 to vector<8x128xf32>
    %13 = arith.mulf %10, %12 : vector<8x128xf32>
    %c1_6 = arith.constant 1 : index
    %14 = memref.load %arg10[%c1_6] : memref<2xf32, #tpu.memory_space<smem>>
    %15 = vector.broadcast %14 : f32 to vector<8x128xf32>
    %16 = arith.addf %13, %15 : vector<8x128xf32>
    %17 = tpu.iota {dimensions = array<i32: 1>} : vector<8x128xi32>
    %c-1_i32 = arith.constant -1 : i32
    %18 = vector.broadcast %c-1_i32 : i32 to vector<8x128xi32>
    %19 = arith.addi %17, %18 : vector<8x128xi32>
    %c0_i32_7 = arith.constant 0 : i32
    %20 = vector.broadcast %c0_i32_7 : i32 to vector<8x128xi32>
    %21 = arith.cmpi sge, %19, %20 : vector<8x128xi32>
    %c-1_i32_8 = arith.constant -1 : i32
    %22 = vector.broadcast %c-1_i32_8 : i32 to vector<8x128xi32>
    %23 = arith.addi %17, %22 : vector<8x128xi32>
    %c128_i32 = arith.constant 128 : i32
    %24 = vector.broadcast %c128_i32 : i32 to vector<8x128xi32>
    %25 = arith.cmpi slt, %23, %24 : vector<8x128xi32>
    %26 = arith.andi %21, %25 : vector<8x128xi1>
    %c1_i32 = arith.constant 1 : i32
    %27 = tpu.dynamic_rotate %9 by %c1_i32 dim 1 : vector<8x128xf32>, i32 -> vector<8x128xf32>
    %cst = arith.constant 0.000000e+00 : f32
    %28 = vector.broadcast %cst : f32 to vector<8x128xf32>
    %29 = arith.select %26, %27, %28 : vector<8x128xi1>, vector<8x128xf32>
    %c1_i32_9 = arith.constant 1 : i32
    %30 = tpu.dynamic_rotate %16 by %c1_i32_9 dim 1 : vector<8x128xf32>, i32 -> vector<8x128xf32>
    %cst_10 = arith.constant 0.000000e+00 : f32
    %31 = vector.broadcast %cst_10 : f32 to vector<8x128xf32>
    %32 = arith.select %26, %30, %31 : vector<8x128xi1>, vector<8x128xf32>
    %c1_i32_11 = arith.constant 1 : i32
    %33 = vector.broadcast %c1_i32_11 : i32 to vector<8x128xi32>
    %34 = arith.addi %17, %33 : vector<8x128xi32>
    %c0_i32_12 = arith.constant 0 : i32
    %35 = vector.broadcast %c0_i32_12 : i32 to vector<8x128xi32>
    %36 = arith.cmpi sge, %34, %35 : vector<8x128xi32>
    %c1_i32_13 = arith.constant 1 : i32
    %37 = vector.broadcast %c1_i32_13 : i32 to vector<8x128xi32>
    %38 = arith.addi %17, %37 : vector<8x128xi32>
    %c128_i32_14 = arith.constant 128 : i32
    %39 = vector.broadcast %c128_i32_14 : i32 to vector<8x128xi32>
    %40 = arith.cmpi slt, %38, %39 : vector<8x128xi32>
    %41 = arith.andi %36, %40 : vector<8x128xi1>
    %c127_i32 = arith.constant 127 : i32
    %42 = tpu.dynamic_rotate %9 by %c127_i32 dim 1 : vector<8x128xf32>, i32 -> vector<8x128xf32>
    %cst_15 = arith.constant 0.000000e+00 : f32
    %43 = vector.broadcast %cst_15 : f32 to vector<8x128xf32>
    %44 = arith.select %41, %42, %43 : vector<8x128xi1>, vector<8x128xf32>
    %c127_i32_16 = arith.constant 127 : i32
    %45 = tpu.dynamic_rotate %16 by %c127_i32_16 dim 1 : vector<8x128xf32>, i32 -> vector<8x128xf32>
    %cst_17 = arith.constant 0.000000e+00 : f32
    %46 = vector.broadcast %cst_17 : f32 to vector<8x128xf32>
    %47 = arith.select %41, %45, %46 : vector<8x128xi1>, vector<8x128xf32>
    %c4_i32 = arith.constant 4 : i32
    %48 = arith.muli %arg0, %c4_i32 : i32
    %c0_i32_18 = arith.constant 0 : i32
    %49 = arith.addi %48, %c0_i32_18 : i32
    %c6_i32 = arith.constant 6 : i32
    %50 = arith.muli %49, %c6_i32 : i32
    %cst_19 = arith.constant 0.000000e+00 : f32
    %51 = vector.broadcast %cst_19 : f32 to vector<8x128xf32>
    %c0_i32_20 = arith.constant 0 : i32
    %52 = arith.addi %50, %c0_i32_20 : i32
    %53 = arith.index_cast %52 : i32 to index
    %54 = memref.load %arg7[%53] : memref<24xf32, #tpu.memory_space<smem>>
    %55 = vector.broadcast %54 : f32 to vector<8x128xf32>
    %56 = arith.mulf %55, %29 : vector<8x128xf32>
    %57 = arith.addf %51, %56 : vector<8x128xf32>
    %c3_i32 = arith.constant 3 : i32
    %58 = arith.addi %50, %c3_i32 : i32
    %c0_i32_21 = arith.constant 0 : i32
    %59 = arith.addi %58, %c0_i32_21 : i32
    %60 = arith.index_cast %59 : i32 to index
    %61 = memref.load %arg7[%60] : memref<24xf32, #tpu.memory_space<smem>>
    %62 = vector.broadcast %61 : f32 to vector<8x128xf32>
    %63 = arith.mulf %62, %32 : vector<8x128xf32>
    %64 = arith.addf %57, %63 : vector<8x128xf32>
    %c1_i32_22 = arith.constant 1 : i32
    %65 = arith.addi %50, %c1_i32_22 : i32
    %66 = arith.index_cast %65 : i32 to index
    %67 = memref.load %arg7[%66] : memref<24xf32, #tpu.memory_space<smem>>
    %68 = vector.broadcast %67 : f32 to vector<8x128xf32>
    %69 = arith.mulf %68, %9 : vector<8x128xf32>
    %70 = arith.addf %64, %69 : vector<8x128xf32>
    %c3_i32_23 = arith.constant 3 : i32
    %71 = arith.addi %50, %c3_i32_23 : i32
    %c1_i32_24 = arith.constant 1 : i32
    %72 = arith.addi %71, %c1_i32_24 : i32
    %73 = arith.index_cast %72 : i32 to index
    %74 = memref.load %arg7[%73] : memref<24xf32, #tpu.memory_space<smem>>
    %75 = vector.broadcast %74 : f32 to vector<8x128xf32>
    %76 = arith.mulf %75, %16 : vector<8x128xf32>
    %77 = arith.addf %70, %76 : vector<8x128xf32>
    %c2_i32 = arith.constant 2 : i32
    %78 = arith.addi %50, %c2_i32 : i32
    %79 = arith.index_cast %78 : i32 to index
    %80 = memref.load %arg7[%79] : memref<24xf32, #tpu.memory_space<smem>>
    %81 = vector.broadcast %80 : f32 to vector<8x128xf32>
    %82 = arith.mulf %81, %44 : vector<8x128xf32>
    %83 = arith.addf %77, %82 : vector<8x128xf32>
    %c3_i32_25 = arith.constant 3 : i32
    %84 = arith.addi %50, %c3_i32_25 : i32
    %c2_i32_26 = arith.constant 2 : i32
    %85 = arith.addi %84, %c2_i32_26 : i32
    %86 = arith.index_cast %85 : i32 to index
    %87 = memref.load %arg7[%86] : memref<24xf32, #tpu.memory_space<smem>>
    %88 = vector.broadcast %87 : f32 to vector<8x128xf32>
    %89 = arith.mulf %88, %47 : vector<8x128xf32>
    %90 = arith.addf %83, %89 : vector<8x128xf32>
    %91 = arith.index_cast %49 : i32 to index
    %92 = memref.load %arg8[%91] : memref<4xf32, #tpu.memory_space<smem>>
    %93 = vector.broadcast %92 : f32 to vector<8x128xf32>
    %94 = arith.addf %90, %93 : vector<8x128xf32>
    %95 = arith.index_cast %49 : i32 to index
    %96 = memref.load %arg11[%95] : memref<4xf32, #tpu.memory_space<smem>>
    %97 = vector.broadcast %96 : f32 to vector<8x128xf32>
    %98 = arith.mulf %94, %97 : vector<8x128xf32>
    %99 = arith.index_cast %49 : i32 to index
    %100 = memref.load %arg12[%99] : memref<4xf32, #tpu.memory_space<smem>>
    %101 = vector.broadcast %100 : f32 to vector<8x128xf32>
    %102 = arith.addf %98, %101 : vector<8x128xf32>
    %cst_27 = arith.constant 0.000000e+00 : f32
    %103 = vector.broadcast %cst_27 : f32 to vector<8x128xf32>
    %104 = arith.maximumf %102, %103 : vector<8x128xf32>
    %105 = arith.truncf %104 : vector<8x128xf32> to vector<8x128xbf16>
    %c0_28 = arith.constant 0 : index
    %c0_29 = arith.constant 0 : index
    %106 = vector.load %arg14[%c0_28, %c0_29] : memref<8x512xbf16, #tpu.memory_space<vmem>>, vector<8x128xbf16>
    tpu.vector_store %arg14[%c0_28, %c0_29], %105 {strides = array<i32>} : memref<8x512xbf16, #tpu.memory_space<vmem>>, vector<8x128xbf16>,
    %c4_i32_30 = arith.constant 4 : i32
    %107 = arith.muli %arg0, %c4_i32_30 : i32
    %c1_i32_31 = arith.constant 1 : i32
    %108 = arith.addi %107, %c1_i32_31 : i32
    %c6_i32_32 = arith.constant 6 : i32
    %109 = arith.muli %108, %c6_i32_32 : i32
    %cst_33 = arith.constant 0.000000e+00 : f32
    %110 = vector.broadcast %cst_33 : f32 to vector<8x128xf32>
    %c0_i32_34 = arith.constant 0 : i32
    %111 = arith.addi %109, %c0_i32_34 : i32
    %112 = arith.index_cast %111 : i32 to index
    %113 = memref.load %arg7[%112] : memref<24xf32, #tpu.memory_space<smem>>
    %114 = vector.broadcast %113 : f32 to vector<8x128xf32>
    %115 = arith.mulf %114, %29 : vector<8x128xf32>
    %116 = arith.addf %110, %115 : vector<8x128xf32>
    %c3_i32_35 = arith.constant 3 : i32
    %117 = arith.addi %109, %c3_i32_35 : i32
    %c0_i32_36 = arith.constant 0 : i32
    %118 = arith.addi %117, %c0_i32_36 : i32
    %119 = arith.index_cast %118 : i32 to index
    %120 = memref.load %arg7[%119] : memref<24xf32, #tpu.memory_space<smem>>
    %121 = vector.broadcast %120 : f32 to vector<8x128xf32>
    %122 = arith.mulf %121, %32 : vector<8x128xf32>
    %123 = arith.addf %116, %122 : vector<8x128xf32>
    %c1_i32_37 = arith.constant 1 : i32
    %124 = arith.addi %109, %c1_i32_37 : i32
    %125 = arith.index_cast %124 : i32 to index
    %126 = memref.load %arg7[%125] : memref<24xf32, #tpu.memory_space<smem>>
    %127 = vector.broadcast %126 : f32 to vector<8x128xf32>
    %128 = arith.mulf %127, %9 : vector<8x128xf32>
    %129 = arith.addf %123, %128 : vector<8x128xf32>
    %c3_i32_38 = arith.constant 3 : i32
    %130 = arith.addi %109, %c3_i32_38 : i32
    %c1_i32_39 = arith.constant 1 : i32
    %131 = arith.addi %130, %c1_i32_39 : i32
    %132 = arith.index_cast %131 : i32 to index
    %133 = memref.load %arg7[%132] : memref<24xf32, #tpu.memory_space<smem>>
    %134 = vector.broadcast %133 : f32 to vector<8x128xf32>
    %135 = arith.mulf %134, %16 : vector<8x128xf32>
    %136 = arith.addf %129, %135 : vector<8x128xf32>
    %c2_i32_40 = arith.constant 2 : i32
    %137 = arith.addi %109, %c2_i32_40 : i32
    %138 = arith.index_cast %137 : i32 to index
    %139 = memref.load %arg7[%138] : memref<24xf32, #tpu.memory_space<smem>>
    %140 = vector.broadcast %139 : f32 to vector<8x128xf32>
    %141 = arith.mulf %140, %44 : vector<8x128xf32>
    %142 = arith.addf %136, %141 : vector<8x128xf32>
    %c3_i32_41 = arith.constant 3 : i32
    %143 = arith.addi %109, %c3_i32_41 : i32
    %c2_i32_42 = arith.constant 2 : i32
    %144 = arith.addi %143, %c2_i32_42 : i32
    %145 = arith.index_cast %144 : i32 to index
    %146 = memref.load %arg7[%145] : memref<24xf32, #tpu.memory_space<smem>>
    %147 = vector.broadcast %146 : f32 to vector<8x128xf32>
    %148 = arith.mulf %147, %47 : vector<8x128xf32>
    %149 = arith.addf %142, %148 : vector<8x128xf32>
    %150 = arith.index_cast %108 : i32 to index
    %151 = memref.load %arg8[%150] : memref<4xf32, #tpu.memory_space<smem>>
    %152 = vector.broadcast %151 : f32 to vector<8x128xf32>
    %153 = arith.addf %149, %152 : vector<8x128xf32>
    %154 = arith.index_cast %108 : i32 to index
    %155 = memref.load %arg11[%154] : memref<4xf32, #tpu.memory_space<smem>>
    %156 = vector.broadcast %155 : f32 to vector<8x128xf32>
    %157 = arith.mulf %153, %156 : vector<8x128xf32>
    %158 = arith.index_cast %108 : i32 to index
    %159 = memref.load %arg12[%158] : memref<4xf32, #tpu.memory_space<smem>>
    %160 = vector.broadcast %159 : f32 to vector<8x128xf32>
    %161 = arith.addf %157, %160 : vector<8x128xf32>
    %cst_43 = arith.constant 0.000000e+00 : f32
    %162 = vector.broadcast %cst_43 : f32 to vector<8x128xf32>
    %163 = arith.maximumf %161, %162 : vector<8x128xf32>
    %164 = arith.truncf %163 : vector<8x128xf32> to vector<8x128xbf16>
    %c0_44 = arith.constant 0 : index
    %c128 = arith.constant 128 : index
    %165 = vector.load %arg14[%c0_44, %c128] : memref<8x512xbf16, #tpu.memory_space<vmem>>, vector<8x128xbf16>
    tpu.vector_store %arg14[%c0_44, %c128], %164 {strides = array<i32>} : memref<8x512xbf16, #tpu.memory_space<vmem>>, vector<8x128xbf16>,
    %c4_i32_45 = arith.constant 4 : i32
    %166 = arith.muli %arg0, %c4_i32_45 : i32
    %c2_i32_46 = arith.constant 2 : i32
    %167 = arith.addi %166, %c2_i32_46 : i32
    %c6_i32_47 = arith.constant 6 : i32
    %168 = arith.muli %167, %c6_i32_47 : i32
    %cst_48 = arith.constant 0.000000e+00 : f32
    %169 = vector.broadcast %cst_48 : f32 to vector<8x128xf32>
    %c0_i32_49 = arith.constant 0 : i32
    %170 = arith.addi %168, %c0_i32_49 : i32
    %171 = arith.index_cast %170 : i32 to index
    %172 = memref.load %arg7[%171] : memref<24xf32, #tpu.memory_space<smem>>
    %173 = vector.broadcast %172 : f32 to vector<8x128xf32>
    %174 = arith.mulf %173, %29 : vector<8x128xf32>
    %175 = arith.addf %169, %174 : vector<8x128xf32>
    %c3_i32_50 = arith.constant 3 : i32
    %176 = arith.addi %168, %c3_i32_50 : i32
    %c0_i32_51 = arith.constant 0 : i32
    %177 = arith.addi %176, %c0_i32_51 : i32
    %178 = arith.index_cast %177 : i32 to index
    %179 = memref.load %arg7[%178] : memref<24xf32, #tpu.memory_space<smem>>
    %180 = vector.broadcast %179 : f32 to vector<8x128xf32>
    %181 = arith.mulf %180, %32 : vector<8x128xf32>
    %182 = arith.addf %175, %181 : vector<8x128xf32>
    %c1_i32_52 = arith.constant 1 : i32
    %183 = arith.addi %168, %c1_i32_52 : i32
    %184 = arith.index_cast %183 : i32 to index
    %185 = memref.load %arg7[%184] : memref<24xf32, #tpu.memory_space<smem>>
    %186 = vector.broadcast %185 : f32 to vector<8x128xf32>
    %187 = arith.mulf %186, %9 : vector<8x128xf32>
    %188 = arith.addf %182, %187 : vector<8x128xf32>
    %c3_i32_53 = arith.constant 3 : i32
    %189 = arith.addi %168, %c3_i32_53 : i32
    %c1_i32_54 = arith.constant 1 : i32
    %190 = arith.addi %189, %c1_i32_54 : i32
    %191 = arith.index_cast %190 : i32 to index
    %192 = memref.load %arg7[%191] : memref<24xf32, #tpu.memory_space<smem>>
    %193 = vector.broadcast %192 : f32 to vector<8x128xf32>
    %194 = arith.mulf %193, %16 : vector<8x128xf32>
    %195 = arith.addf %188, %194 : vector<8x128xf32>
    %c2_i32_55 = arith.constant 2 : i32
    %196 = arith.addi %168, %c2_i32_55 : i32
    %197 = arith.index_cast %196 : i32 to index
    %198 = memref.load %arg7[%197] : memref<24xf32, #tpu.memory_space<smem>>
    %199 = vector.broadcast %198 : f32 to vector<8x128xf32>
    %200 = arith.mulf %199, %44 : vector<8x128xf32>
    %201 = arith.addf %195, %200 : vector<8x128xf32>
    %c3_i32_56 = arith.constant 3 : i32
    %202 = arith.addi %168, %c3_i32_56 : i32
    %c2_i32_57 = arith.constant 2 : i32
    %203 = arith.addi %202, %c2_i32_57 : i32
    %204 = arith.index_cast %203 : i32 to index
    %205 = memref.load %arg7[%204] : memref<24xf32, #tpu.memory_space<smem>>
    %206 = vector.broadcast %205 : f32 to vector<8x128xf32>
    %207 = arith.mulf %206, %47 : vector<8x128xf32>
    %208 = arith.addf %201, %207 : vector<8x128xf32>
    %209 = arith.index_cast %167 : i32 to index
    %210 = memref.load %arg8[%209] : memref<4xf32, #tpu.memory_space<smem>>
    %211 = vector.broadcast %210 : f32 to vector<8x128xf32>
    %212 = arith.addf %208, %211 : vector<8x128xf32>
    %213 = arith.index_cast %167 : i32 to index
    %214 = memref.load %arg11[%213] : memref<4xf32, #tpu.memory_space<smem>>
    %215 = vector.broadcast %214 : f32 to vector<8x128xf32>
    %216 = arith.mulf %212, %215 : vector<8x128xf32>
    %217 = arith.index_cast %167 : i32 to index
    %218 = memref.load %arg12[%217] : memref<4xf32, #tpu.memory_space<smem>>
    %219 = vector.broadcast %218 : f32 to vector<8x128xf32>
    %220 = arith.addf %216, %219 : vector<8x128xf32>
    %cst_58 = arith.constant 0.000000e+00 : f32
    %221 = vector.broadcast %cst_58 : f32 to vector<8x128xf32>
    %222 = arith.maximumf %220, %221 : vector<8x128xf32>
    %223 = arith.truncf %222 : vector<8x128xf32> to vector<8x128xbf16>
    %c0_59 = arith.constant 0 : index
    %c256 = arith.constant 256 : index
    %224 = vector.load %arg14[%c0_59, %c256] : memref<8x512xbf16, #tpu.memory_space<vmem>>, vector<8x128xbf16>
    tpu.vector_store %arg14[%c0_59, %c256], %223 {strides = array<i32>} : memref<8x512xbf16, #tpu.memory_space<vmem>>, vector<8x128xbf16>,
    %c4_i32_60 = arith.constant 4 : i32
    %225 = arith.muli %arg0, %c4_i32_60 : i32
    %c3_i32_61 = arith.constant 3 : i32
    %226 = arith.addi %225, %c3_i32_61 : i32
    %c6_i32_62 = arith.constant 6 : i32
    %227 = arith.muli %226, %c6_i32_62 : i32
    %cst_63 = arith.constant 0.000000e+00 : f32
    %228 = vector.broadcast %cst_63 : f32 to vector<8x128xf32>
    %c0_i32_64 = arith.constant 0 : i32
    %229 = arith.addi %227, %c0_i32_64 : i32
    %230 = arith.index_cast %229 : i32 to index
    %231 = memref.load %arg7[%230] : memref<24xf32, #tpu.memory_space<smem>>
    %232 = vector.broadcast %231 : f32 to vector<8x128xf32>
    %233 = arith.mulf %232, %29 : vector<8x128xf32>
    %234 = arith.addf %228, %233 : vector<8x128xf32>
    %c3_i32_65 = arith.constant 3 : i32
    %235 = arith.addi %227, %c3_i32_65 : i32
    %c0_i32_66 = arith.constant 0 : i32
    %236 = arith.addi %235, %c0_i32_66 : i32
    %237 = arith.index_cast %236 : i32 to index
    %238 = memref.load %arg7[%237] : memref<24xf32, #tpu.memory_space<smem>>
    %239 = vector.broadcast %238 : f32 to vector<8x128xf32>
    %240 = arith.mulf %239, %32 : vector<8x128xf32>
    %241 = arith.addf %234, %240 : vector<8x128xf32>
    %c1_i32_67 = arith.constant 1 : i32
    %242 = arith.addi %227, %c1_i32_67 : i32
    %243 = arith.index_cast %242 : i32 to index
    %244 = memref.load %arg7[%243] : memref<24xf32, #tpu.memory_space<smem>>
    %245 = vector.broadcast %244 : f32 to vector<8x128xf32>
    %246 = arith.mulf %245, %9 : vector<8x128xf32>
    %247 = arith.addf %241, %246 : vector<8x128xf32>
    %c3_i32_68 = arith.constant 3 : i32
    %248 = arith.addi %227, %c3_i32_68 : i32
    %c1_i32_69 = arith.constant 1 : i32
    %249 = arith.addi %248, %c1_i32_69 : i32
    %250 = arith.index_cast %249 : i32 to index
    %251 = memref.load %arg7[%250] : memref<24xf32, #tpu.memory_space<smem>>
    %252 = vector.broadcast %251 : f32 to vector<8x128xf32>
    %253 = arith.mulf %252, %16 : vector<8x128xf32>
    %254 = arith.addf %247, %253 : vector<8x128xf32>
    %c2_i32_70 = arith.constant 2 : i32
    %255 = arith.addi %227, %c2_i32_70 : i32
    %256 = arith.index_cast %255 : i32 to index
    %257 = memref.load %arg7[%256] : memref<24xf32, #tpu.memory_space<smem>>
    %258 = vector.broadcast %257 : f32 to vector<8x128xf32>
    %259 = arith.mulf %258, %44 : vector<8x128xf32>
    %260 = arith.addf %254, %259 : vector<8x128xf32>
    %c3_i32_71 = arith.constant 3 : i32
    %261 = arith.addi %227, %c3_i32_71 : i32
    %c2_i32_72 = arith.constant 2 : i32
    %262 = arith.addi %261, %c2_i32_72 : i32
    %263 = arith.index_cast %262 : i32 to index
    %264 = memref.load %arg7[%263] : memref<24xf32, #tpu.memory_space<smem>>
    %265 = vector.broadcast %264 : f32 to vector<8x128xf32>
    %266 = arith.mulf %265, %47 : vector<8x128xf32>
    %267 = arith.addf %260, %266 : vector<8x128xf32>
    %268 = arith.index_cast %226 : i32 to index
    %269 = memref.load %arg8[%268] : memref<4xf32, #tpu.memory_space<smem>>
    %270 = vector.broadcast %269 : f32 to vector<8x128xf32>
    %271 = arith.addf %267, %270 : vector<8x128xf32>
    %272 = arith.index_cast %226 : i32 to index
    %273 = memref.load %arg11[%272] : memref<4xf32, #tpu.memory_space<smem>>
    %274 = vector.broadcast %273 : f32 to vector<8x128xf32>
    %275 = arith.mulf %271, %274 : vector<8x128xf32>
    %276 = arith.index_cast %226 : i32 to index
    %277 = memref.load %arg12[%276] : memref<4xf32, #tpu.memory_space<smem>>
    %278 = vector.broadcast %277 : f32 to vector<8x128xf32>
    %279 = arith.addf %275, %278 : vector<8x128xf32>
    %cst_73 = arith.constant 0.000000e+00 : f32
    %280 = vector.broadcast %cst_73 : f32 to vector<8x128xf32>
    %281 = arith.maximumf %279, %280 : vector<8x128xf32>
    %282 = arith.truncf %281 : vector<8x128xf32> to vector<8x128xbf16>
    %c0_74 = arith.constant 0 : index
    %c384 = arith.constant 384 : index
    %283 = vector.load %arg14[%c0_74, %c384] : memref<8x512xbf16, #tpu.memory_space<vmem>>, vector<8x128xbf16>
    tpu.vector_store %arg14[%c0_74, %c384], %282 {strides = array<i32>} : memref<8x512xbf16, #tpu.memory_space<vmem>>, vector<8x128xbf16>,
    %c0_75 = arith.constant 0 : index
    %c0_76 = arith.constant 0 : index
    %284 = vector.load %arg15[%c0_75, %c0_76] : memref<8x128xf32, #tpu.memory_space<vmem>>, vector<8x128xf32>
    %c0_77 = arith.constant 0 : index
    %c0_78 = arith.constant 0 : index
    %285 = vector.load %arg14[%c0_77, %c0_78] : memref<8x512xbf16, #tpu.memory_space<vmem>>, vector<8x512xbf16>
    %c0_79 = arith.constant 0 : index
    %c0_80 = arith.constant 0 : index
    %286 = vector.load %arg3[%c0_79, %c0_80] : memref<512x128xbf16, #tpu.memory_space<vmem>>, vector<512x128xbf16>
    %cst_81 = arith.constant dense<0.000000e+00> : vector<8x128xf32>
    %287 = tpu.matmul %285, %286, %cst_81 {dimension_numbers = #tpu.dot_dimension_numbers<[1], [0], [0], [1], [0, 0, 1, 1], [], []>} : vector<8x512xbf16>, vector<512x128xbf16>, vector<8x128xf32> -> vector<8x128xf32>
    %288 = arith.addf %284, %287 : vector<8x128xf32>
    %c0_82 = arith.constant 0 : index
    %c0_83 = arith.constant 0 : index
    %289 = vector.load %arg15[%c0_82, %c0_83] : memref<8x128xf32, #tpu.memory_space<vmem>>, vector<8x128xf32>
    tpu.vector_store %arg15[%c0_82, %c0_83], %288 {strides = array<i32>} : memref<8x128xf32, #tpu.memory_space<vmem>>, vector<8x128xf32>,
    %c0_i32_84 = arith.constant 0 : i32
    %290 = arith.cmpi eq, %arg0, %c0_i32_84 : i32
    %291 = arith.extui %290 : i1 to i32
    %c0_i32_85 = arith.constant 0 : i32
    %292 = arith.cmpi ne, %291, %c0_i32_85 : i32
    scf.if %292 {
      %c0_86 = arith.constant 0 : index
      %c0_87 = arith.constant 0 : index
      %293 = vector.load %arg15[%c0_86, %c0_87] : memref<8x128xf32, #tpu.memory_space<vmem>>, vector<8x128xf32>
      %c0_88 = arith.constant 0 : index
      %c0_89 = arith.constant 0 : index
      %294 = vector.load %arg4[%c0_88, %c0_89] : memref<1x128xf32, #tpu.memory_space<vmem>>, vector<1x128xf32>
      %295 = vector.broadcast %294 : vector<1x128xf32> to vector<8x128xf32>
      %296 = arith.addf %293, %295 : vector<8x128xf32>
      %c0_90 = arith.constant 0 : index
      %c0_91 = arith.constant 0 : index
      %297 = vector.load %arg5[%c0_90, %c0_91] : memref<1x128xf32, #tpu.memory_space<vmem>>, vector<1x128xf32>
      %298 = vector.broadcast %297 : vector<1x128xf32> to vector<8x128xf32>
      %299 = arith.mulf %296, %298 : vector<8x128xf32>
      %c0_92 = arith.constant 0 : index
      %c0_93 = arith.constant 0 : index
      %300 = vector.load %arg6[%c0_92, %c0_93] : memref<1x128xf32, #tpu.memory_space<vmem>>, vector<1x128xf32>
      %301 = vector.broadcast %300 : vector<1x128xf32> to vector<8x128xf32>
      %302 = arith.addf %299, %301 : vector<8x128xf32>
      %cst_94 = arith.constant 0.000000e+00 : f32
      %303 = vector.broadcast %cst_94 : f32 to vector<8x128xf32>
      %304 = arith.maximumf %302, %303 : vector<8x128xf32>
      %305 = arith.truncf %304 : vector<8x128xf32> to vector<8x128xbf16>
      %c0_95 = arith.constant 0 : index
      %c0_96 = arith.constant 0 : index
      %306 = vector.load %arg13[%c0_95, %c0_96] : memref<8x128xbf16, #tpu.memory_space<vmem>>, vector<8x128xbf16>
      tpu.vector_store %arg13[%c0_95, %c0_96], %305 {strides = array<i32>} : memref<8x128xbf16, #tpu.memory_space<vmem>>, vector<8x128xbf16>,
    } else {
    }
    return
  }
  func.func @transform_0(%arg0: i32) -> (i32, i32) {
    %c0_i32 = arith.constant 0 : i32
    %c0_i32_0 = arith.constant 0 : i32
    %c0_i32_1 = arith.constant 0 : i32
    return %c0_i32, %c0_i32_0 : i32, i32
  }
  func.func @transform_1(%arg0: i32) -> (i32, i32) {
    %c0_i32 = arith.constant 0 : i32
    %c0_i32_0 = arith.constant 0 : i32
    %c0_i32_1 = arith.constant 0 : i32
    return %c0_i32, %c0_i32_0 : i32, i32
  }
  func.func @transform_2(%arg0: i32) -> (i32, i32) {
    %c0_i32 = arith.constant 0 : i32
    %c0_i32_0 = arith.constant 0 : i32
    return %arg0, %c0_i32 : i32, i32
  }
  func.func @transform_3(%arg0: i32) -> (i32, i32) {
    %c0_i32 = arith.constant 0 : i32
    %c0_i32_0 = arith.constant 0 : i32
    %c0_i32_1 = arith.constant 0 : i32
    return %c0_i32, %c0_i32_0 : i32, i32
  }
  func.func @transform_4(%arg0: i32) -> (i32, i32) {
    %c0_i32 = arith.constant 0 : i32
    %c0_i32_0 = arith.constant 0 : i32
    %c0_i32_1 = arith.constant 0 : i32
    return %c0_i32, %c0_i32_0 : i32, i32
  }
  func.func @transform_5(%arg0: i32) -> (i32, i32) {
    %c0_i32 = arith.constant 0 : i32
    %c0_i32_0 = arith.constant 0 : i32
    %c0_i32_1 = arith.constant 0 : i32
    return %c0_i32, %c0_i32_0 : i32, i32
  }
  func.func @transform_6(%arg0: i32) -> i32 {
    %c0_i32 = arith.constant 0 : i32
    %c0_i32_0 = arith.constant 0 : i32
    return %c0_i32 : i32
  }
  func.func @transform_7(%arg0: i32) -> i32 {
    %c0_i32 = arith.constant 0 : i32
    %c0_i32_0 = arith.constant 0 : i32
    return %c0_i32 : i32
  }
  func.func @transform_8(%arg0: i32) -> i32 {
    %c0_i32 = arith.constant 0 : i32
    %c0_i32_0 = arith.constant 0 : i32
    return %c0_i32 : i32
  }
  func.func @transform_9(%arg0: i32) -> i32 {
    %c0_i32 = arith.constant 0 : i32
    %c0_i32_0 = arith.constant 0 : i32
    return %c0_i32 : i32
  }
  func.func @transform_10(%arg0: i32) -> i32 {
    %c0_i32 = arith.constant 0 : i32
    %c0_i32_0 = arith.constant 0 : i32
    return %c0_i32 : i32
  }
  func.func @transform_11(%arg0: i32) -> i32 {
    %c0_i32 = arith.constant 0 : i32
    %c0_i32_0 = arith.constant 0 : i32
    return %c0_i32 : i32
  }
  func.func @transform_12(%arg0: i32) -> (i32, i32) {
    %c0_i32 = arith.constant 0 : i32
    %c0_i32_0 = arith.constant 0 : i32
    %c0_i32_1 = arith.constant 0 : i32
    return %c0_i32, %c0_i32_0 : i32, i32
  }
}

</mosaic_0001>

<bundles_post_ra>
// kernel: tpu_custom_call.1
= control target key start
LH: loop header
LB: loop body
LE: loop exit
PB: predicated region body
PF: predicated region fallthrough
CT: control target
= control target key end

     0   :  { %17 = vsyncpa [#allocation5], 0  ;;  %s1393_s0 = inlined_call_operand.hbm [shape: f32[8,128], index: 0, kind: input, shape index: {}]   ;;  %s1394_s1 = inlined_call_operand.hbm [shape: f32[8,128], index: 1, kind: input, shape index: {}]   ;;  %s1395_s2 = inlined_call_operand.hbm [shape: bf16[512,128], index: 2, kind: input, shape index: {}]   ;;  %s1396_s3 = inlined_call_operand.vmem [shape: f32[1,128], index: 3, kind: input, shape index: {}]   ;;  %s1397_s4 = inlined_call_operand.vmem [shape: f32[1,128], index: 4, kind: input, shape index: {}]   ;;  %s1398_s5 = inlined_call_operand.vmem [shape: f32[1,128], index: 5, kind: input, shape index: {}]   ;;  %s1399_s6 = inlined_call_operand.vmem [shape: f32[24], index: 6, kind: input, shape index: {}]   ;;  %s1400_s7 = inlined_call_operand.vmem [shape: f32[4], index: 7, kind: input, shape index: {}]   ;;  %s1401_s8 = inlined_call_operand.vmem [shape: f32[2], index: 8, kind: input, shape index: {}]   ;;  %s1402_s9 = inlined_call_operand.vmem [shape: f32[2], index: 9, kind: input, shape index: {}]   ;;  %s1403_s10 = inlined_call_operand.vmem [shape: f32[4], index: 10, kind: input, shape index: {}]   ;;  %s1404_s11 = inlined_call_operand.vmem [shape: f32[4], index: 11, kind: input, shape index: {}]   ;;  %s1405_s12 = inlined_call_operand.hbm [shape: bf16[8,128], index: 12, kind: output, shape index: {}]  }
   0x1   :  { %18 = vsyncpa [#allocation9], 0 }
   0x2   :  { %19 = vsyncpa [#allocation7], 0 }
   0x3   :  { %20 = vsyncpa [#allocation13], 0 }
   0x4   :  { %21 = vsyncpa [#allocation16], 0 }
   0x5   :  { %22 = vsyncpa [#allocation19], 0  ;;  %s78_s23 = sshll.u32 %s1400_s7, 4  ;;  %s79_s23 = int_to_ptr.vmem [resolvable:$true] %s78_s23 }
   0x6   :  { %23 = vsyncpa [#allocation6], 0  ;;  %s1111_s24 = smov [#allocation8]   ;;  %s937_s28 = scalar_lea.hbm %s1394_s1, 128 }
   0x7   :  { %s40_s25 = sshll.u32 %s1111_s24, 4  ;;  %p938_p0 = scmp.ne.s32.totalorder %s1394_s1, %s937_s28  ;;  %s41_s25 = int_to_ptr.vmem [resolvable:$true] %s40_s25 }
   0x8   :  { %p941_p1 = scmp.lt.u32.totalorder %s937_s28, %s1394_s1 }
   0xa   :  { %p943_p2 = pnand %p941_p1, %p938_p0 }
   0xc   :  { %946 = shalt.err (!%p943_p2)
}
   0xd   :  { %s947_s7 = scalar_lea.vmem %s41_s25, 128  ;;  %p952_p4 = scmp.lt.s32.totalorder %s41_s25, %s41_s25 }
   0xe   :  { %p948_p3 = scmp.ne.s32.totalorder %s41_s25, %s947_s7  ;;  %p953_p5 = scmp.lt.s32.totalorder %s947_s7, %s947_s7 }
  0x10   :  { %p954_p6 = por %p953_p5, %p952_p4 }
  0x12   :  { %p955_p7 = pnand %p954_p6, %p948_p3 }
  0x14   :  { %958 = shalt.err (!%p955_p7)
}
  0x15   :  { %43 = dma.hbm_to_vmem [thread:$0]  %s1394_s1, 128, %s41_s25, [#allocation9]  }
  0x16   :  { %s959_s17 = scalar_lea.vmem %s79_s23, 16  ;;  %p964_p9 = scmp.lt.s32.totalorder %s79_s23, %s79_s23 }
  0x17   :  { %p960_p8 = scmp.ne.s32.totalorder %s79_s23, %s959_s17  ;;  %p965_p10 = scmp.lt.s32.totalorder %s959_s17, %s959_s17 }
  0x19   :  { %p966_p11 = por %p965_p10, %p964_p9 }
  0x1b   :  { %p967_p12 = pnand %p966_p11, %p960_p8 }
  0x1d   :  { %970 = shalt.err (!%p967_p12)
}
  0x1e   :  { %s1112_s18 = smov [#allocation12]   ;;  %s98_s21 = sshll.u32 %s1402_s9, 4  ;;  %s99_s21 = int_to_ptr.vmem [resolvable:$true] %s98_s21 }
  0x1f   :  { %81 = dma.vmem_to_smem %s79_s23, 16, %s1112_s18, [#allocation13]  }
  0x20   :  { %s971_s22 = scalar_lea.vmem %s99_s21, 16  ;;  %p976_p0 = scmp.lt.s32.totalorder %s99_s21, %s99_s21 }
  0x21   :  { %p972_p13 = scmp.ne.s32.totalorder %s99_s21, %s971_s22  ;;  %p977_p1 = scmp.lt.s32.totalorder %s971_s22, %s971_s22 }
  0x23   :  { %p978_p2 = por %p977_p1, %p976_p0 }
  0x25   :  { %p979_p3 = pnand %p978_p2, %p972_p13 }
  0x27   :  { %982 = shalt.err (!%p979_p3)
}
  0x28   :  { %s1113_s1 = smov [#allocation15]   ;;  %s1114_s24 = smov [#allocation4]  }
  0x29   :  { %101 = dma.vmem_to_smem %s99_s21, 16, %s1113_s1, [#allocation16]  }
  0x2a   :  { %s30_s25 = sshll.u32 %s1114_s24, 4  ;;  %s1115_s26 = smov [#allocation10]   ;;  %s31_s25 = int_to_ptr.vmem [resolvable:$true] %s30_s25 }
  0x2b   :  { %s49_s27 = sshll.u32 %s1115_s26, 4  ;;  %s983_s29 = scalar_lea.hbm %s1393_s0, 128  ;;  %s50_s27 = int_to_ptr.vmem [resolvable:$true] %s49_s27 }
  0x2c   :  { %p984_p4 = scmp.ne.s32.totalorder %s1393_s0, %s983_s29  ;;  %p987_p5 = scmp.lt.u32.totalorder %s983_s29, %s1393_s0 }
  0x2e   :  { %p989_p6 = pnand %p987_p5, %p984_p4 }
  0x30   :  { %992 = shalt.err (!%p989_p6)
}
  0x31   :  { %s993_s7 = scalar_lea.vmem %s31_s25, 128  ;;  %p998_p8 = scmp.lt.s32.totalorder %s31_s25, %s31_s25 }
  0x32   :  { %p994_p7 = scmp.ne.s32.totalorder %s31_s25, %s993_s7  ;;  %p999_p9 = scmp.lt.s32.totalorder %s993_s7, %s993_s7 }
  0x34   :  { %p1000_p10 = por %p999_p9, %p998_p8 }
  0x36   :  { %p1001_p11 = pnand %p1000_p10, %p994_p7 }
  0x38   :  { %1004 = shalt.err (!%p1001_p11)
}
  0x39   :  { %33 = dma.hbm_to_vmem [thread:$0]  %s1393_s0, 128, %s31_s25, [#allocation5]  }
  0x3a   :  { %s68_s19 = sshll.u32 %s1399_s6, 4  ;;  %s1005_s22 = scalar_lea.hbm %s1395_s2, 4096  ;;  %s69_s19 = int_to_ptr.vmem [resolvable:$true] %s68_s19 }
  0x3b   :  { %p1006_p12 = scmp.ne.s32.totalorder %s1395_s2, %s1005_s22  ;;  %p1009_p13 = scmp.lt.u32.totalorder %s1005_s22, %s1395_s2 }
  0x3d   :  { %p1011_p0 = pnand %p1009_p13, %p1006_p12 }
  0x3f   :  { %1014 = shalt.err (!%p1011_p0)
}
  0x40   :  { %s1015_s0 = scalar_lea.vmem %s50_s27, 4096  ;;  %p1020_p2 = scmp.lt.s32.totalorder %s50_s27, %s50_s27 }
  0x41   :  { %p1016_p1 = scmp.ne.s32.totalorder %s50_s27, %s1015_s0  ;;  %p1021_p3 = scmp.lt.s32.totalorder %s1015_s0, %s1015_s0 }
  0x43   :  { %p1022_p4 = por %p1021_p3, %p1020_p2 }
  0x45   :  { %p1023_p5 = pnand %p1022_p4, %p1016_p1 }
  0x47   :  { %1026 = shalt.err (!%p1023_p5)
}
  0x48   :  { %s1116_s6 = smov 64   ;;  %s1117_s25 = smov 4  }
  0x49   :  { %55 = dma.hbm_to_vmem [thread:$0]  %s1395_s2, 4096, %s50_s27, [#allocation9], %s1116_s6, %s1116_s6, %s1117_s25  }
  0x4a   :  { %s1027_s9 = scalar_lea.vmem %s69_s19, 16  ;;  %p1032_p7 = scmp.lt.s32.totalorder %s69_s19, %s69_s19 }
  0x4b   :  { %p1028_p6 = scmp.ne.s32.totalorder %s69_s19, %s1027_s9  ;;  %p1033_p8 = scmp.lt.s32.totalorder %s1027_s9, %s1027_s9 }
  0x4d   :  { %p1034_p9 = por %p1033_p8, %p1032_p7 }
  0x4f   :  { %p1035_p10 = pnand %p1034_p9, %p1028_p6 }
  0x51   :  { %1038 = shalt.err (!%p1035_p10)
}
  0x52   :  { %s1118_s30 = smov [#allocation11]   ;;  %s88_s7 = sshll.u32 %s1401_s8, 4  ;;  %s89_s7 = int_to_ptr.vmem [resolvable:$true] %s88_s7 }
  0x53   :  { %71 = dma.vmem_to_smem %s69_s19, 16, %s1118_s30, [#allocation7]  }
  0x54   :  { %s108_s17 = sshll.u32 %s1403_s10, 4  ;;  %s1039_s2 = scalar_lea.vmem %s89_s7, 16  ;;  %s109_s17 = int_to_ptr.vmem [resolvable:$true] %s108_s17 }
  0x55   :  { %p1040_p11 = scmp.ne.s32.totalorder %s89_s7, %s1039_s2  ;;  %p1044_p12 = scmp.lt.s32.totalorder %s89_s7, %s89_s7 }
  0x56   :  { %p1045_p13 = scmp.lt.s32.totalorder %s1039_s2, %s1039_s2 }
  0x58   :  { %p1046_p0 = por %p1045_p13, %p1044_p12 }
  0x5a   :  { %p1047_p1 = pnand %p1046_p0, %p1040_p11 }
  0x5c   :  { %1050 = shalt.err (!%p1047_p1)
}
  0x5d   :  { %s1119_s27 = smov [#allocation14]   ;;  %s1051_s18 = scalar_lea.vmem %s109_s17, 16 }
  0x5e   :  { %91 = dma.vmem_to_smem %s89_s7, 16, %s1119_s27, [#allocation13]  }
  0x5f   :  { %p1052_p2 = scmp.ne.s32.totalorder %s109_s17, %s1051_s18  ;;  %p1056_p3 = scmp.lt.s32.totalorder %s109_s17, %s109_s17 }
  0x60   :  { %p1057_p4 = scmp.lt.s32.totalorder %s1051_s18, %s1051_s18 }
  0x62   :  { %p1058_p5 = por %p1057_p4, %p1056_p3 }
  0x64   :  { %p1059_p6 = pnand %p1058_p5, %p1052_p2 }
  0x66   :  { %1062 = shalt.err (!%p1059_p6)
}
  0x67   :  { %s1120_s8 = smov [#allocation17]   ;;  %s118_s20 = sshll.u32 %s1404_s11, 4  ;;  %s119_s20 = int_to_ptr.vmem [resolvable:$true] %s118_s20 }
  0x68   :  { %111 = dma.vmem_to_smem %s109_s17, 16, %s1120_s8, [#allocation16]  }
  0x69   :  { %s1063_s21 = scalar_lea.vmem %s119_s20, 16  ;;  %p1068_p8 = scmp.lt.s32.totalorder %s119_s20, %s119_s20 }
  0x6a   :  { %p1064_p7 = scmp.ne.s32.totalorder %s119_s20, %s1063_s21  ;;  %p1069_p9 = scmp.lt.s32.totalorder %s1063_s21, %s1063_s21 }
  0x6c   :  { %p1070_p10 = por %p1069_p9, %p1068_p8 }
  0x6e   :  { %p1071_p11 = pnand %p1070_p10, %p1064_p7 }
  0x70   :  { %1074 = shalt.err (!%p1071_p11)
}
  0x71   :  { %s1121_s22 = smov [#allocation18]  }
  0x72   :  { %121 = dma.vmem_to_smem %s119_s20, 16, %s1121_s22, [#allocation19]  }
  0x73   :  { %1097 = dma.done.wait [#allocation5], 128  }
  0x74   :  { %1098 = vsyncadd [#allocation5], 4294967168 }
  0x75   :  { %1099 = dma.done.wait [#allocation9], 4224  }
  0x76   :  { %1100 = vsyncadd [#allocation9], 4294963072 }
  0x77   :  { %1101 = dma.done.wait [#allocation7], 16  }
  0x78   :  { %1102 = vsyncadd [#allocation7], 4294967280 }
  0x79   :  { %1103 = dma.done.wait [#allocation13], 32  }
  0x7a   :  { %1104 = vsyncadd [#allocation13], 4294967264 }
  0x7b   :  { %1105 = dma.done.wait [#allocation16], 32  }
  0x7c   :  { %1106 = vsyncadd [#allocation16], 4294967264 }
  0x7d   :  { %1107 = dma.done.wait [#allocation19], 16  }
  0x7e   :  { %1108 = vsyncadd [#allocation19], 4294967280 }
  0x7f   :  { %149 = sfence }
  0x80   :  { %s157_s11 = sld [smem:[#allocation14]]  ;;  %s770_s24 = sld [smem:[#allocation14 + $0x1]]  ;;  %v901_v0 = vld [vmem:[#allocation10 + $0x40] sm:$0xff]   ;;  %v156_v2 = vld [vmem:[#allocation4] sm:$0xff]  ;;  %v163_v4 = vld [vmem:[#allocation8] sm:$0xff]  ;;  %v170_v42 = vlaneseq }
  0x81   :  { %s160_s1 = sld [smem:[#allocation15]]  ;;  %s771_s26 = sld [smem:[#allocation15 + $0x1]]  ;;  %v902_v1 = vld [vmem:[#allocation10 + $0xc0] sm:$0xff]   ;;  %843 = vmatprep.subr.bf16.mxu0 %v901_v0  ;;  %v905_v13 = vld [vmem:[#allocation10 + $0x48] sm:$0xff]   ;;  %v909_v18 = vld [vmem:[#allocation10 + $0x50] sm:$0xff]  }
  0x82   :  { %v903_v3 = vld [vmem:[#allocation10] sm:$0xff]   ;;  %865 = vmatprep.subr.bf16.mxu1 %v902_v1  ;;  %s1122_s23 = smov 1   ;;  %s1123_s0 = smov 127   ;;  %v906_v15 = vld [vmem:[#allocation10 + $0xc8] sm:$0xff]   ;;  %v910_v19 = vld [vmem:[#allocation10 + $0xd0] sm:$0xff]   ;;  %v171_v43 = vand.u32 127, %v170_v42 }
  0x83   :  { %844 = vmatpush3.bf16.msra.mxu0 %v903_v3  ;;  %v904_v7 = vld [vmem:[#allocation10 + $0x80] sm:$0xff]   ;;  %v907_v16 = vld [vmem:[#allocation10 + $0x8] sm:$0xff]   ;;  %v911_v20 = vld [vmem:[#allocation10 + $0x10] sm:$0xff]   ;;  %s1252_s6 = sld [smem:[#allocation11]]  ;;  %s1254_s25 = sld [smem:[#allocation11 + $0x6]] }
  0x84   :  { %866 = vmatpush3.bf16.msra.mxu1 %v904_v7  ;;  %845 = vmatprep.subr.bf16.mxu0 %v905_v13  ;;  %v908_v17 = vld [vmem:[#allocation10 + $0x88] sm:$0xff]   ;;  %v912_v21 = vld [vmem:[#allocation10 + $0x90] sm:$0xff]   ;;  %v913_v22 = vld [vmem:[#allocation10 + $0x58] sm:$0xff]   ;;  %s1256_s28 = sld [smem:[#allocation11 + $0xc]]  ;;  %s1258_s29 = sld [smem:[#allocation11 + $0x12]]  ;;  %v172_v44 = vadd.s32 4294967295, %v171_v43 }
  0x85   :  { %867 = vmatprep.subr.bf16.mxu1 %v906_v15  ;;  %v914_v23 = vld [vmem:[#allocation10 + $0xd8] sm:$0xff]   ;;  %v917_v26 = vld [vmem:[#allocation10 + $0x60] sm:$0xff]   ;;  %v921_v30 = vld [vmem:[#allocation10 + $0x68] sm:$0xff]   ;;  %s1260_s9 = sld [smem:[#allocation11 + $0x3]]  ;;  %s1262_s30 = sld [smem:[#allocation11 + $0x1]]  ;;  %v182_v45 = vadd.s32 1, %v171_v43 }
  0x86   :  { %v158_v5 = vstv %s157_s11  ;;  %v165_v9 = vstv %s770_s24  ;;  %v915_v24 = vld [vmem:[#allocation10 + $0x18] sm:$0xff]   ;;  %v918_v27 = vld [vmem:[#allocation10 + $0xe0] sm:$0xff]   ;;  %v922_v31 = vld [vmem:[#allocation10 + $0xe8] sm:$0xff]   ;;  %s1264_s13 = sld [smem:[#allocation11 + $0x9]]  ;;  %s1266_s14 = sld [smem:[#allocation11 + $0x7]]  ;;  %vm173_vm0 = vcmp.ge.s32.totalorder %v172_v44, 0 }
  0x87   :  { %v161_v6 = vstv %s160_s1  ;;  %v159_v8 = vmul.f32 %v158_v5, %v156_v2  ;;  %v166_v10 = vmul.f32 %v165_v9, %v163_v4  ;;  %v168_v11 = vstv %s771_s26  ;;  %846 = vmatpush3.bf16.msra.mxu0 %v907_v16  ;;  %v916_v25 = vld [vmem:[#allocation10 + $0x98] sm:$0xff]   ;;  %v919_v28 = vld [vmem:[#allocation10 + $0x20] sm:$0xff]   ;;  %v923_v32 = vld [vmem:[#allocation10 + $0x28] sm:$0xff]   ;;  %s1268_s7 = sld [smem:[#allocation11 + $0xf]]  ;;  %s1270_s15 = sld [smem:[#allocation11 + $0xd]] }
  0x88   :  { %868 = vmatpush3.bf16.msra.mxu1 %v908_v17  ;;  %847 = vmatprep.subr.bf16.mxu0 %v909_v18  ;;  %v920_v29 = vld [vmem:[#allocation10 + $0xa0] sm:$0xff]   ;;  %v924_v33 = vld [vmem:[#allocation10 + $0xa8] sm:$0xff]   ;;  %v925_v34 = vld [vmem:[#allocation10 + $0x70] sm:$0xff]   ;;  %s1272_s16 = sld [smem:[#allocation11 + $0x13]]  ;;  %s1274_s17 = sld [smem:[#allocation11 + $0x4]]  ;;  %vm184_vm1 = vcmp.lt.s32.totalorder %v182_v45, 128 }
  0x89   :  { %v1244_v12 = vadd.f32 %v161_v6, %v159_v8  ;;  %v1247_v14 = vadd.f32 %v168_v11, %v166_v10  ;;  %869 = vmatprep.subr.bf16.mxu1 %v910_v19  ;;  %v926_v35 = vld [vmem:[#allocation10 + $0xf0] sm:$0xff]   ;;  %v929_v38 = vld [vmem:[#allocation10 + $0x78] sm:$0xff]   ;;  %s1276_s2 = sld [smem:[#allocation11 + $0xa]]  ;;  %s1278_s27 = sld [smem:[#allocation11 + $0x10]]  ;;  %v195_v47 = vstv %s1252_s6  ;;  %v238_v48 = vstv %s1254_s25 }
  0x8a   :  { %v927_v36 = vld [vmem:[#allocation10 + $0x30] sm:$0xff]   ;;  %v930_v39 = vld [vmem:[#allocation10 + $0xf8] sm:$0xff]   ;;  %s1280_s18 = sld [smem:[#allocation11 + $0x15]]  ;;  %s1282_s8 = sld [smem:[#allocation11 + $0x16]]  ;;  %v281_v49 = vstv %s1256_s28  ;;  %v324_v51 = vstv %s1258_s29 }
  0x8b   :  { %176 = vrot.lane.b32.xlu0 %v1244_v12, %s1122_s23  ;;  %186 = vrot.lane.b32.xlu1 %v1244_v12, %s1123_s0  ;;  %v928_v37 = vld [vmem:[#allocation10 + $0xb0] sm:$0xff]   ;;  %v931_v40 = vld [vmem:[#allocation10 + $0x38] sm:$0xff]   ;;  %s1284_s10 = sld [smem:[#allocation11 + $0x2]]  ;;  %s1286_s19 = sld [smem:[#allocation11 + $0x8]]  ;;  %v205_v46 = vstv %s1262_s30  ;;  %v200_v52 = vstv %s1260_s9 }
  0x8c   :  { %848 = vmatpush3.bf16.msra.mxu0 %v911_v20  ;;  %870 = vmatpush3.bf16.msra.mxu1 %v912_v21  ;;  %v932_v41 = vld [vmem:[#allocation10 + $0xb8] sm:$0xff]   ;;  %s1288_s20 = sld [smem:[#allocation11 + $0xe]]  ;;  %s1290_s21 = sld [smem:[#allocation11 + $0x14]]  ;;  %v248_v50 = vstv %s1266_s14  ;;  %v243_v53 = vstv %s1264_s13  ;;  %v206_v56 = vmul.f32 %v205_v46, %v1244_v12 }
  0x8d   :  { %849 = vmatprep.subr.bf16.mxu0 %v913_v22  ;;  %871 = vmatprep.subr.bf16.mxu1 %v914_v23  ;;  %s1293_s22 = sld [smem:[#allocation11 + $0x5]]  ;;  %v291_v54 = vstv %s1270_s15  ;;  %s1303_s11 = sld [smem:[#allocation11 + $0xb]]  ;;  %v286_v59 = vstv %s1268_s7  ;;  %v249_v60 = vmul.f32 %v248_v50, %v1244_v12 }
  0x8e   :  { %v334_v55 = vstv %s1272_s16  ;;  %v210_v57 = vstv %s1274_s17  ;;  %s1308_s1 = sld [smem:[#allocation11 + $0x11]]  ;;  %s1310_s24 = sld [smem:[#allocation11 + $0x17]]  ;;  %v292_v2 = vmul.f32 %v291_v54, %v1244_v12 }
  0x8f   :  { %179 = vrot.lane.b32.xlu0 %v1247_v14, %s1122_s23  ;;  %189 = vrot.lane.b32.xlu1 %v1247_v14, %s1123_s0  ;;  %v253_v61 = vstv %s1276_s2  ;;  %v296_v62 = vstv %s1278_s27  ;;  %v335_v4 = vmul.f32 %v334_v55, %v1244_v12  ;;  %v211_v5 = vmul.f32 %v210_v57, %v1247_v14  ;;  %s1332_s26 = sld [smem:[#allocation12]]  ;;  %s1334_s23 = sld [smem:[#allocation12 + $0x1]] }
  0x90   :  { %850 = vmatpush3.bf16.msra.mxu0 %v915_v24  ;;  %872 = vmatpush3.bf16.msra.mxu1 %v916_v25  ;;  %v329_v1 = vstv %s1280_s18  ;;  %v339_v3 = vstv %s1282_s8  ;;  %v254_v8 = vmul.f32 %v253_v61, %v1247_v14  ;;  %v297_v9 = vmul.f32 %v296_v62, %v1247_v14  ;;  %s1338_s0 = sld [smem:[#allocation12 + $0x2]]  ;;  %s1341_s6 = sld [smem:[#allocation12 + $0x3]] }
  0x91   :  { %851 = vmatprep.subr.bf16.mxu0 %v917_v26  ;;  %873 = vmatprep.subr.bf16.mxu1 %v918_v27  ;;  %v215_v6 = vstv %s1284_s10  ;;  %v258_v7 = vstv %s1286_s19  ;;  %v340_v16 = vmul.f32 %v339_v3, %v1247_v14  ;;  %s1344_s25 = sld [smem:[#allocation17]]  ;;  %s1346_s28 = sld [smem:[#allocation17 + $0x1]] }
  0x92   :  { %v301_v10 = vstv %s1288_s20  ;;  %v344_v11 = vstv %s1290_s21  ;;  %s1348_s29 = sld [smem:[#allocation17 + $0x2]]  ;;  %s1350_s9 = sld [smem:[#allocation17 + $0x3]] }
  0x93   :  { %v220_v12 = vstv %s1293_s22  ;;  %v263_v27 = vstv %s1303_s11  ;;  %s1352_s30 = sld [smem:[#allocation18]]  ;;  %s1354_s13 = sld [smem:[#allocation18 + $0x1]] }
  0x94   :  { %852 = vmatpush3.bf16.msra.mxu0 %v919_v28  ;;  %874 = vmatpush3.bf16.msra.mxu1 %v920_v29  ;;  %v306_v14 = vstv %s1308_s1  ;;  %v349_v28 = vstv %s1310_s24  ;;  %s1356_s14 = sld [smem:[#allocation18 + $0x2]]  ;;  %s1358_s7 = sld [smem:[#allocation18 + $0x3]] }
  0x95   :  { %853 = vmatprep.subr.bf16.mxu0 %v921_v30  ;;  %875 = vmatprep.subr.bf16.mxu1 %v922_v31  ;;  %v224_v54 = vstv %s1332_s26  ;;  %v267_v55 = vstv %s1334_s23  ;;  %s1124_s8 = smov [#allocation20]  }
  0x96   :  { %v353_v57 = vstv %s1341_s6  ;;  %s756_s10 = sshll.u32 %s1124_s8, 4  ;;  %s757_s10 = int_to_ptr.vmem [resolvable:$true] %s756_s10 }
  0x97   :  { %v227_v62 = vstv %s1344_s25  ;;  %p1080_p13 = scmp.lt.s32.totalorder %s757_s10, %s757_s10 }
  0x98   :  { %854 = vmatpush3.bf16.msra.mxu0 %v923_v32  ;;  %876 = vmatpush3.bf16.msra.mxu1 %v924_v33 }
  0x99   :  { %855 = vmatprep.subr.bf16.mxu0 %v925_v34  ;;  %877 = vmatprep.subr.bf16.mxu1 %v926_v35 }
  0x9c   :  { %856 = vmatpush3.bf16.msra.mxu0 %v927_v36  ;;  %878 = vmatpush3.bf16.msra.mxu1 %v928_v37 }
  0x9d   :  { %857 = vmatprep.subr.bf16.mxu0 %v929_v38  ;;  %879 = vmatprep.subr.bf16.mxu1 %v930_v39 }
  0xa0   :  { %858 = vmatpush3.bf16.msra.mxu0 %v931_v40  ;;  %880 = vmatpush3.bf16.msra.mxu1 %v932_v41 }
  0xfd   :  { %v177_v58 = vpop.permute.xlu0 %176  ;;  %v187_v63 = vpop.permute.xlu1 %186 }
  0xfe   :  { %v178_v0 = vsel %vm173_vm0, %v177_v58, 0.0  ;;  %v188_v17 = vsel %vm184_vm1, %v187_v63, 0.0  ;;  %v270_v63 = vstv %s1346_s28 }
  0xff   :  { %v196_v13 = vmul.f32 %v195_v47, %v178_v0  ;;  %v239_v19 = vmul.f32 %v238_v48, %v178_v0  ;;  %v282_v20 = vmul.f32 %v281_v49, %v178_v0  ;;  %v325_v21 = vmul.f32 %v324_v51, %v178_v0 }
 0x100   :  { %v216_v34 = vmul.f32 %v215_v6, %v188_v17  ;;  %v259_v35 = vmul.f32 %v258_v7, %v188_v17  ;;  %v302_v36 = vmul.f32 %v301_v10, %v188_v17  ;;  %v345_v37 = vmul.f32 %v344_v11, %v188_v17 }
 0x101   :  { %v180_v15 = vpop.permute.xlu0 %179  ;;  %v190_v18 = vpop.permute.xlu1 %189  ;;  %v313_v0 = vstv %s1348_s29  ;;  %v230_v6 = vstv %s1352_s30  ;;  %v273_v7 = vstv %s1354_s13 }
 0x102   :  { %v181_v22 = vsel %vm173_vm0, %v180_v15, 0.0  ;;  %v191_v29 = vsel %vm184_vm1, %v190_v18, 0.0 }
 0x103   :  { %v201_v23 = vmul.f32 %v200_v52, %v181_v22  ;;  %v244_v24 = vmul.f32 %v243_v53, %v181_v22  ;;  %v287_v25 = vmul.f32 %v286_v59, %v181_v22  ;;  %v330_v26 = vmul.f32 %v329_v1, %v181_v22 }
 0x104   :  { %v221_v42 = vmul.f32 %v220_v12, %v191_v29  ;;  %v264_v43 = vmul.f32 %v263_v27, %v191_v29  ;;  %v307_v44 = vmul.f32 %v306_v14, %v191_v29  ;;  %v350_v45 = vmul.f32 %v349_v28, %v191_v29 }
 0x105   :  { %v202_v30 = vadd.f32 %v201_v23, %v196_v13  ;;  %v245_v31 = vadd.f32 %v244_v24, %v239_v19  ;;  %v288_v32 = vadd.f32 %v287_v25, %v282_v20  ;;  %v331_v33 = vadd.f32 %v330_v26, %v325_v21 }
 0x106   :  { %v356_v1 = vstv %s1350_s9 }
 0x107   :  { %v207_v38 = vadd.f32 %v206_v56, %v202_v30  ;;  %v250_v39 = vadd.f32 %v249_v60, %v245_v31  ;;  %v293_v40 = vadd.f32 %v292_v2, %v288_v32  ;;  %v336_v41 = vadd.f32 %v335_v4, %v331_v33 }
 0x108   :  { %v310_v56 = vstv %s1338_s0 }
 0x109   :  { %v212_v46 = vadd.f32 %v211_v5, %v207_v38  ;;  %v255_v47 = vadd.f32 %v254_v8, %v250_v39  ;;  %v298_v48 = vadd.f32 %v297_v9, %v293_v40  ;;  %v341_v49 = vadd.f32 %v340_v16, %v336_v41  ;;  %v840_v40 = vld [vmem:[%s1396_s3] ss:$0 sm:$0xff]  ;;  %s1075_s3 = scalar_lea.vmem %s757_s10, 64 }
 0x10a   :  { %v316_v8 = vstv %s1356_s14  ;;  %v359_v9 = vstv %s1358_s7  ;;  %p1076_p12 = scmp.ne.s32.totalorder %s757_s10, %s1075_s3  ;;  %p1081_p0 = scmp.lt.s32.totalorder %s1075_s3, %s1075_s3 }
 0x10b   :  { %v217_v50 = vadd.f32 %v216_v34, %v212_v46  ;;  %v260_v51 = vadd.f32 %v259_v35, %v255_v47  ;;  %v303_v52 = vadd.f32 %v302_v36, %v298_v48  ;;  %v346_v53 = vadd.f32 %v345_v37, %v341_v49  ;;  %v842_v46 = vld [vmem:[%s1398_s5] ss:$0 sm:$0xff] }
 0x10c   :  { %p1082_p1 = por %p1081_p0, %p1080_p13 }
 0x10d   :  { %v222_v58 = vadd.f32 %v221_v42, %v217_v50  ;;  %v265_v59 = vadd.f32 %v264_v43, %v260_v51  ;;  %v308_v60 = vadd.f32 %v307_v44, %v303_v52  ;;  %v351_v61 = vadd.f32 %v350_v45, %v346_v53  ;;  %v841_v44 = vld [vmem:[%s1397_s4] ss:$0 sm:$0xff] }
 0x10e   :  { %p1083_p2 = pnand %p1082_p1, %p1076_p12 }
 0x10f   :  { %v225_v2 = vadd.f32 %v224_v54, %v222_v58  ;;  %v268_v3 = vadd.f32 %v267_v55, %v265_v59  ;;  %v311_v4 = vadd.f32 %v310_v56, %v308_v60  ;;  %v354_v5 = vadd.f32 %v353_v57, %v351_v61 }
 0x111   :  { %v228_v10 = vmul.f32 %v227_v62, %v225_v2  ;;  %v271_v11 = vmul.f32 %v270_v63, %v268_v3  ;;  %v314_v13 = vmul.f32 %v313_v0, %v311_v4  ;;  %v357_v15 = vmul.f32 %v356_v1, %v354_v5 }
 0x113   :  { %v231_v16 = vadd.f32 %v230_v6, %v228_v10  ;;  %v274_v17 = vadd.f32 %v273_v7, %v271_v11  ;;  %v317_v12 = vadd.f32 %v316_v8, %v314_v13  ;;  %v360_v18 = vadd.f32 %v359_v9, %v357_v15 }
 0x115   :  { %v232_v19 = vmax.f32 %v231_v16, 0.0  ;;  %v275_v20 = vmax.f32 %v274_v17, 0.0  ;;  %v318_v21 = vmax.f32 %v317_v12, 0.0  ;;  %v361_v22 = vmax.f32 %v360_v18, 0.0 }
 0x117   :  { %v233_v23 = vpack.c.bf16 %v232_v19, %v232_v19  ;;  %v276_v24 = vpack.c.bf16 %v275_v20, %v275_v20  ;;  %v319_v25 = vpack.c.bf16 %v318_v21, %v318_v21  ;;  %v362_v26 = vpack.c.bf16 %v361_v22, %v361_v22 }
 0x119   :  { %234 = vst [vmem:[#allocation2] sm:$0xf] %v233_v23  ;;  %277 = vst [vmem:[#allocation2 + $0x4] sm:$0xf] %v276_v24 }
 0x11a   :  { %320 = vst [vmem:[#allocation2 + $0x8] sm:$0xf] %v319_v25  ;;  %363 = vst [vmem:[#allocation2 + $0xc] sm:$0xf] %v362_v26 }
 0x120   :  { %v365_v27 = vld [vmem:[#allocation2] sm:$0xff] }
 0x121   :  { %v366_v14 = vld [vmem:[#allocation2 + $0x8] sm:$0xff]  ;;  %v804_v28 = vcombine.low %v365_v27, %v365_v27  ;;  %v805_v29 = vcombine.high %v365_v27, %v365_v27 }
 0x122   :  { %v806_v30 = vcombine.low %v366_v14, %v366_v14  ;;  %v807_v31 = vcombine.high %v366_v14, %v366_v14 }
 0x123   :  { %669 = vmatprep.mubr.bf16.mxu0 %v805_v29 }
 0x124   :  { %709 = vmatprep.mubr.bf16.mxu1 %v807_v31  ;;  %670 = vmatmul.mubr.bf16.vlgmr.msra.gmra.mrb[0].mxu0 %v804_v28 }
 0x125   :  { %710 = vmatmul.mubr.bf16.vlgmr.msra.gmra.mrb[0].mxu1 %v806_v30 }
 0x1f7   :  { %v859_v32 = vpop.f32.mrb[0].mxu0 }
 0x1f8   :  { %v881_v33 = vpop.f32.mrb[0].mxu1  ;;  %v860_v34 = vpop.f32.mrb[1].mxu0 }
 0x1f9   :  { %v882_v35 = vpop.f32.mrb[1].mxu1  ;;  %v861_v36 = vadd.f32 %v860_v34, %v859_v32  ;;  %v862_v38 = vpop.f32.mrb[2].mxu0 }
 0x1fa   :  { %v883_v37 = vadd.f32 %v882_v35, %v881_v33  ;;  %v884_v39 = vpop.f32.mrb[2].mxu1  ;;  %v863_v41 = vpop.f32.mrb[3].mxu0 }
 0x1fb   :  { %v885_v42 = vpop.f32.mrb[3].mxu1 }
 0x1fc   :  { %v712_v43 = vadd.f32 %v883_v37, %v861_v36 }
 0x1fe   :  { %v730_v45 = vadd.f32 %v840_v40, %v712_v43 }
 0x200   :  { %v738_v47 = vmul.f32 %v841_v44, %v730_v45 }
 0x202   :  { %v746_v48 = vadd.f32 %v842_v46, %v738_v47 }
 0x204   :  { %v747_v49 = vmax.f32 %v746_v48, 0.0 }
 0x206   :  { %v748_v50 = vpack.c.bf16 %v747_v49, %v747_v49 }
 0x208   :  { %749 = vst [vmem:[#allocation20] sm:$0xf] %v748_v50 }
 0x209   :  { %1086 = shalt.err (!%p1083_p2)
}
 0x20a   :  { %s1087_s20 = scalar_lea.hbm %s1405_s12, 64 }
 0x20b   :  { %p1088_p3 = scmp.ne.s32.totalorder %s1405_s12, %s1087_s20  ;;  %p1091_p4 = scmp.lt.u32.totalorder %s1087_s20, %s1405_s12 }
 0x20d   :  { %p1093_p5 = pnand %p1091_p4, %p1088_p3 }
 0x20f   :  { %1096 = shalt.err (!%p1093_p5)
}
 0x210   :  { %759 = dma.vmem_to_hbm [thread:$0]  %s757_s10, 64, %s1405_s12, [#allocation6]  }
 0x211   :  { %1109 = dma.done.wait [#allocation6], 64  }
 0x212   :  { %1110 = vsyncadd [#allocation6], 4294967232 }
 0x213   :  { %763 = vsyncpa [#allocation5], 1 }
 0x214   :  { %764 = vsyncpa [#allocation9], 1 }
 0x215   :  { %765 = vsyncpa [#allocation6], 1 }
 0x216   :  { %766 = vsyncpa [#allocation7], 1 }
 0x217   :  { %767 = vsyncpa [#allocation13], 1 }
 0x218   :  { %768 = vsyncpa [#allocation16], 1 }
 0x219   :  { %769 = vsyncpa [#allocation19], 1 }

</bundles_post_ra>
